<compile_context>
chip_gen: v5e
topology: v5e:2x2
jax: 0.10.0
libtpu: 0.0.40
codegen_flags: <defaults>
</compile_context>

<pallas_src>
import jax
import jax.numpy as jnp
from jax import lax
from jax.experimental import pallas as pl
from jax.experimental.pallas import tpu as pltpu

# -------- configuration (ConvPool(ch_in=16, 'mish', 'gn')) --------------------
CH_IN = 16          # ch_in == ch_out for ConvPool
GROUPS = 8          # GroupNorm(num_groups=8, num_channels=ch_in)
GN_EPS = 1e-5


# ------------------------------ Pallas kernel ---------------------------------
def convpool_kernel(p_ref, w_ref, b_ref, s_ref, st_ref, mgc_ref, mcg_ref,
                    gam_ref, bet_ref, o_ref):
    # p_ref  : (9*C, TN)   K-concatenated conv patches, TN = TB*HW (lanes = spatial)
    # w_ref  : (C, 9*C)    packed conv weights  w[o, (ki*3+kj)*C + c] = conv_w[o, c, ki, kj]
    # b_ref  : (C, 1)      conv bias (column)
    # s_ref  : (TN, TB)    position -> sample one-hot  (per-sample lane reduce)
    # st_ref : (TB, TN)    sample -> position one-hot  (per-sample lane broadcast)
    # mgc_ref: (2G, 2C)    blockdiag(channel->group one-hot) applied to [sum; sumsq]
    # mcg_ref: (2C, 2G)    blockdiag(group->channel one-hot) applied to [mean; inv]
    # gam_ref: (C, 1)      gn weight (column)
    # bet_ref: (C, 1)      gn bias (column)
    # o_ref  : (C, TN)     lane-dense output block
    C, TN = o_ref.shape
    TB = s_ref.shape[1]
    G = mgc_ref.shape[0] // 2
    HW = TN // TB
    count = float(HW * (C // G))

    # ---- conv 3x3 / stride 2: ONE fused K = 9*C matmul on the MXU, bias add ---
    y = jnp.dot(w_ref[...], p_ref[...],
                preferred_element_type=jnp.float32) + b_ref[...]        # (C, TN)

    # ---- Mish: y * tanh(softplus(y)), threshold 20, single exp + EUP recip ----
    t = jnp.exp(jnp.minimum(y, 20.0))
    u = (1.0 + t) * (1.0 + t)
    a = jnp.where(y > 20.0, y,
                  y * (u - 1.0) * pl.reciprocal(u + 1.0, approx=False))  # (C, TN)

    # ---- GroupNorm stats: per-(channel, sample) sums over HW via one matmul ---
    a2 = jnp.concatenate([a, a * a], axis=0)                             # (2C, TN)
    ssum = jnp.dot(a2, s_ref[...], preferred_element_type=jnp.float32)   # (2C, TB)
    gsum = jnp.dot(mgc_ref[...], ssum,
                   preferred_element_type=jnp.float32)                   # (2G, TB)
    mean_g = gsum[:G] * (1.0 / count)                                    # (G, TB)
    var_g = jnp.maximum(gsum[G:] * (1.0 / count) - mean_g * mean_g, 0.0)
    inv_g = lax.rsqrt(var_g + GN_EPS)                                    # (G, TB)

    # ---- fold the GN affine into a per-(channel, sample) scale / shift --------
    cb = jnp.dot(mcg_ref[...], jnp.concatenate([mean_g, inv_g], axis=0),
                 preferred_element_type=jnp.float32)                     # (2C, TB)
    scale = cb[C:] * gam_ref[...]                                        # inv_c * gamma
    shift = bet_ref[...] - cb[:C] * scale                                # beta - mean*scale

    # ---- lane-broadcast scale/shift over HW (exact one-hot matmul) and apply --
    r = jnp.dot(jnp.concatenate([scale, shift], axis=0), st_ref[...],
                preferred_element_type=jnp.float32)                      # (2C, TN)
    o_ref[...] = a * r[:C] + r[C:]


# ------------------------------ tiling heuristic ------------------------------
def _pick_tb(batch, hw, c):
    """Samples per grid step.  Prefers (in order): fitting the per-step input
    block in a conservative VMEM budget, lane-dense tiles (TB*HW % 128 == 0,
    unmasked stores), >=2 grid steps (v7x: shard over both TensorCores), and
    ~1024 lanes per step (fill the MXU N dim, amortize per-step overhead)."""
    budget = 6 << 20                          # input block bytes (x2 double-buffered)
    per_sample = 9 * c * hw * 4
    cands = []
    for tb in range(1, batch + 1):
        if batch % tb:
            continue
        tn = tb * hw
        if tb != batch and tn % 128 != 0:
            continue                          # keep Mosaic-aligned (8,128) lane tiles
        grid = batch // tb
        cands.append((tb * per_sample <= budget,   # VMEM budget
                      tn % 128 == 0,               # lane-dense stores
                      grid >= 2,                   # v7x: both cores busy
                      min(tn, 1024),               # big matmul N / fewer steps
                      -tb, tb))
    return max(cands)[-1]


# ------------------------------ wrapper ---------------------------------------
@jax.jit
def convpool_forward(x, conv_w, conv_b, gn_w, gn_b):
    """x: (B, C, H, W) float32 NCHW; conv_w: (C, C, 3, 3). Returns (B, C, H//2, W//2)."""
    B, C, H, W = x.shape
    assert C % GROUPS == 0 and H % 2 == 0 and W % 2 == 0
    Ho, Wo = H // 2, W // 2
    HW = Ho * Wo

    # ---- host relayout: pad + 9 shifted stride-2 windows, K-concatenated, -----
    # ---- channels/taps on sublanes, (sample, spatial) flattened on lanes  -----
    xp = jnp.pad(x, ((0, 0), (0, 0), (1, 1), (1, 1)))           # (B, C, H+2, W+2)
    taps = [xp[:, :, ki:ki + H:2, kj:kj + W:2]                  # each (B, C, Ho, Wo)
            for ki in range(3) for kj in range(3)]
    patches = jnp.stack(taps, axis=0)                           # (9, B, C, Ho, Wo)
    patches = jnp.transpose(patches, (0, 2, 1, 3, 4)).reshape(9 * C, B * HW)
    patches = patches.astype(jnp.float32)

    # packed conv weights / bias: w_pack[o, (ki*3+kj)*C + c] = conv_w[o, c, ki, kj]
    w_pack = jnp.transpose(conv_w, (0, 2, 3, 1)).reshape(C, 9 * C).astype(jnp.float32)
    b_col = conv_b.reshape(C, 1).astype(jnp.float32)

    # GroupNorm constants, hoisted out of the sequential grid loop
    cg = C // GROUPS
    mgc = (jnp.arange(GROUPS)[:, None] ==
           jnp.arange(C)[None, :] // cg).astype(jnp.float32)    # (G, C) chan->group
    eye2 = jnp.eye(2, dtype=jnp.float32)
    mgc2 = jnp.kron(eye2, mgc)                                  # (2G, 2C)
    mcg2 = jnp.kron(eye2, mgc.T)                                # (2C, 2G)
    gam_col = gn_w.reshape(C, 1).astype(jnp.float32)
    bet_col = gn_b.reshape(C, 1).astype(jnp.float32)

    # per-sample lane reduce / broadcast one-hots
    TB = _pick_tb(B, HW, C)
    TN = TB * HW
    sel = (jnp.arange(TN)[:, None] // HW ==
           jnp.arange(TB)[None, :]).astype(jnp.float32)         # (TN, TB)
    sel_t = sel.T                                               # (TB, TN)

    out = pl.pallas_call(
        convpool_kernel,
        out_shape=jax.ShapeDtypeStruct((C, B * HW), jnp.float32),
        grid=(B // TB,),
        in_specs=[
            pl.BlockSpec((9 * C, TN), lambda i: (0, i)),
            pl.BlockSpec((C, 9 * C), lambda i: (0, 0)),
            pl.BlockSpec((C, 1), lambda i: (0, 0)),
            pl.BlockSpec((TN, TB), lambda i: (0, 0)),
            pl.BlockSpec((TB, TN), lambda i: (0, 0)),
            pl.BlockSpec((2 * GROUPS, 2 * C), lambda i: (0, 0)),
            pl.BlockSpec((2 * C, 2 * GROUPS), lambda i: (0, 0)),
            pl.BlockSpec((C, 1), lambda i: (0, 0)),
            pl.BlockSpec((C, 1), lambda i: (0, 0)),
        ],
        out_specs=pl.BlockSpec((C, TN), lambda i: (0, i)),
        compiler_params=pltpu.CompilerParams(
            dimension_semantics=("parallel",),
            vmem_limit_bytes=32 << 20),
    )(patches, w_pack, b_col, sel, sel_t, mgc2, mcg2, gam_col, bet_col)

    # (C, B*HW) -> NCHW; cheap transpose of the 4x-downsampled output
    return jnp.transpose(out.reshape(C, B, Ho, Wo), (1, 0, 2, 3))


# ------------------------------ pure-JAX reference ----------------------------
def _mish_ref(y):
    sp = jnp.where(y > 20.0, y, jnp.log1p(jnp.exp(jnp.minimum(y, 20.0))))
    return y * jnp.tanh(sp)


def convpool_reference(x, conv_w, conv_b, gn_w, gn_b):
    y = lax.conv_general_dilated(
        x, conv_w, window_strides=(2, 2), padding=((1, 1), (1, 1)),
        dimension_numbers=("NCHW", "OIHW", "NCHW"))
    y = y + conv_b.reshape(1, -1, 1, 1)
    a = _mish_ref(y)
    B, C, Ho, Wo = a.shape
    ag = a.reshape(B, GROUPS, C // GROUPS, Ho, Wo)
    mean = jnp.mean(ag, axis=(2, 3, 4), keepdims=True)
    var = jnp.mean((ag - mean) ** 2, axis=(2, 3, 4), keepdims=True)
    n = ((ag - mean) / jnp.sqrt(var + GN_EPS)).reshape(B, C, Ho, Wo)
    return n * gn_w.reshape(1, -1, 1, 1) + gn_b.reshape(1, -1, 1, 1)


if __name__ == "__main__":
    key = jax.random.PRNGKey(0)
    kx, kw, kb, kg, kh = jax.random.split(key, 5)

    B, C, H, W = 2, CH_IN, 16, 16
    x = jax.random.normal(kx, (B, C, H, W), dtype=jnp.float32)

    # deterministic parameter init (shapes per nn.Conv2d(C, C, 3) / nn.GroupNorm(8, C))
    fan_in = C * 9
    conv_w = jax.random.normal(kw, (C, C, 3, 3), dtype=jnp.float32) / jnp.sqrt(fan_in)
    conv_b = jax.random.normal(kb, (C,), dtype=jnp.float32) * 0.1
    gn_w = 1.0 + 0.1 * jax.random.normal(kg, (C,), dtype=jnp.float32)
    gn_b = 0.1 * jax.random.normal(kh, (C,), dtype=jnp.float32)

    out = jax.block_until_ready(convpool_forward(x, conv_w, conv_b, gn_w, gn_b))
    ref = convpool_reference(x, conv_w, conv_b, gn_w, gn_b)

    assert out.shape == (B, C, H // 2, W // 2), out.shape
    max_err = float(jnp.max(jnp.abs(out - ref)))
    assert jnp.allclose(out, ref, atol=1e-4, rtol=1e-4), max_err

    print("KERNEL_OK")
</pallas_src>

<mosaic_0001>
module attributes {stable_mosaic.version = 11 : i64} {
  func.func @convpool_kernel(%arg0: i32, %arg1: memref<144x128xf32, #tpu.memory_space<vmem>>, %arg2: memref<16x144xf32, #tpu.memory_space<vmem>>, %arg3: memref<16x1xf32, #tpu.memory_space<vmem>>, %arg4: memref<128x2xf32, #tpu.memory_space<vmem>>, %arg5: memref<2x128xf32, #tpu.memory_space<vmem>>, %arg6: memref<16x32xf32, #tpu.memory_space<vmem>>, %arg7: memref<32x16xf32, #tpu.memory_space<vmem>>, %arg8: memref<16x1xf32, #tpu.memory_space<vmem>>, %arg9: memref<16x1xf32, #tpu.memory_space<vmem>>, %arg10: memref<16x128xf32, #tpu.memory_space<vmem>>) attributes {dimension_semantics = [#tpu.dimension_semantics<parallel>], iteration_bounds = array<i64: 1>, scalar_prefetch = 0 : i64, scratch_operands = 0 : i64, tpu.core_type = #tpu.core_type<tc>, window_params = [{transform_indices = @transform_0, window_bounds = array<i64: 144, 128>}, {pipeline_mode = #tpu.pipeline_mode<synchronous>, transform_indices = @transform_1, window_bounds = array<i64: 16, 144>}, {pipeline_mode = #tpu.pipeline_mode<synchronous>, transform_indices = @transform_2, window_bounds = array<i64: 16, 1>}, {pipeline_mode = #tpu.pipeline_mode<synchronous>, transform_indices = @transform_3, window_bounds = array<i64: 128, 2>}, {pipeline_mode = #tpu.pipeline_mode<synchronous>, transform_indices = @transform_4, window_bounds = array<i64: 2, 128>}, {pipeline_mode = #tpu.pipeline_mode<synchronous>, transform_indices = @transform_5, window_bounds = array<i64: 16, 32>}, {pipeline_mode = #tpu.pipeline_mode<synchronous>, transform_indices = @transform_6, window_bounds = array<i64: 32, 16>}, {pipeline_mode = #tpu.pipeline_mode<synchronous>, transform_indices = @transform_7, window_bounds = array<i64: 16, 1>}, {pipeline_mode = #tpu.pipeline_mode<synchronous>, transform_indices = @transform_8, window_bounds = array<i64: 16, 1>}, {transform_indices = @transform_9, window_bounds = array<i64: 16, 128>}]} {
    %c0 = arith.constant 0 : index
    %c0_0 = arith.constant 0 : index
    %0 = vector.load %arg2[%c0, %c0_0] : memref<16x144xf32, #tpu.memory_space<vmem>>, vector<16x144xf32>
    %c0_1 = arith.constant 0 : index
    %c0_2 = arith.constant 0 : index
    %1 = vector.load %arg1[%c0_1, %c0_2] : memref<144x128xf32, #tpu.memory_space<vmem>>, vector<144x128xf32>
    %cst = arith.constant dense<0.000000e+00> : vector<16x128xf32>
    %2 = tpu.matmul %0, %1, %cst {dimension_numbers = #tpu.dot_dimension_numbers<[1], [0], [0], [1], [0, 0, 1, 1], [], []>} : vector<16x144xf32>, vector<144x128xf32>, vector<16x128xf32> -> vector<16x128xf32>
    %c0_3 = arith.constant 0 : index
    %c0_4 = arith.constant 0 : index
    %3 = vector.load %arg3[%c0_3, %c0_4] : memref<16x1xf32, #tpu.memory_space<vmem>>, vector<16x1xf32>
    %4 = vector.broadcast %3 : vector<16x1xf32> to vector<16x128xf32>
    %5 = arith.addf %2, %4 : vector<16x128xf32>
    %cst_5 = arith.constant 2.000000e+01 : f32
    %6 = vector.broadcast %cst_5 : f32 to vector<16x128xf32>
    %7 = arith.minimumf %5, %6 : vector<16x128xf32>
    %8 = math.exp %7 : vector<16x128xf32>
    %cst_6 = arith.constant 1.000000e+00 : f32
    %9 = vector.broadcast %cst_6 : f32 to vector<16x128xf32>
    %10 = arith.addf %9, %8 : vector<16x128xf32>
    %cst_7 = arith.constant 1.000000e+00 : f32
    %11 = vector.broadcast %cst_7 : f32 to vector<16x128xf32>
    %12 = arith.addf %11, %8 : vector<16x128xf32>
    %13 = arith.mulf %10, %12 : vector<16x128xf32>
    %cst_8 = arith.constant 2.000000e+01 : f32
    %14 = vector.broadcast %cst_8 : f32 to vector<16x128xf32>
    %15 = arith.cmpf ogt, %5, %14 : vector<16x128xf32>
    %cst_9 = arith.constant 1.000000e+00 : f32
    %16 = vector.broadcast %cst_9 : f32 to vector<16x128xf32>
    %17 = arith.subf %13, %16 : vector<16x128xf32>
    %18 = arith.mulf %5, %17 : vector<16x128xf32>
    %cst_10 = arith.constant 1.000000e+00 : f32
    %19 = vector.broadcast %cst_10 : f32 to vector<16x128xf32>
    %20 = arith.addf %13, %19 : vector<16x128xf32>
    %21 = tpu.reciprocal %20 : vector<16x128xf32> -> vector<16x128xf32>
    %22 = arith.mulf %18, %21 : vector<16x128xf32>
    %23 = arith.select %15, %5, %22 : vector<16x128xi1>, vector<16x128xf32>
    %24 = arith.mulf %23, %23 : vector<16x128xf32>
    %25 = tpu.concatenate %23, %24 in 0 : vector<16x128xf32>, vector<16x128xf32> -> vector<32x128xf32>
    %c0_11 = arith.constant 0 : index
    %c0_12 = arith.constant 0 : index
    %26 = vector.load %arg4[%c0_11, %c0_12] : memref<128x2xf32, #tpu.memory_space<vmem>>, vector<128x2xf32>
    %cst_13 = arith.constant dense<0.000000e+00> : vector<32x2xf32>
    %27 = tpu.matmul %25, %26, %cst_13 {dimension_numbers = #tpu.dot_dimension_numbers<[1], [0], [0], [1], [0, 0, 1, 1], [], []>} : vector<32x128xf32>, vector<128x2xf32>, vector<32x2xf32> -> vector<32x2xf32>
    %c0_14 = arith.constant 0 : index
    %c0_15 = arith.constant 0 : index
    %28 = vector.load %arg6[%c0_14, %c0_15] : memref<16x32xf32, #tpu.memory_space<vmem>>, vector<16x32xf32>
    %cst_16 = arith.constant dense<0.000000e+00> : vector<16x2xf32>
    %29 = tpu.matmul %28, %27, %cst_16 {dimension_numbers = #tpu.dot_dimension_numbers<[1], [0], [0], [1], [0, 0, 1, 1], [], []>} : vector<16x32xf32>, vector<32x2xf32>, vector<16x2xf32> -> vector<16x2xf32>
    %30 = vector.extract_strided_slice %29 {offsets = [0, 0], sizes = [8, 2], strides = [1, 1]} : vector<16x2xf32> to vector<8x2xf32>
    %cst_17 = arith.constant 7.812500e-03 : f32
    %31 = vector.broadcast %cst_17 : f32 to vector<8x2xf32>
    %32 = arith.mulf %30, %31 : vector<8x2xf32>
    %33 = vector.extract_strided_slice %29 {offsets = [8, 0], sizes = [8, 2], strides = [1, 1]} : vector<16x2xf32> to vector<8x2xf32>
    %cst_18 = arith.constant 7.812500e-03 : f32
    %34 = vector.broadcast %cst_18 : f32 to vector<8x2xf32>
    %35 = arith.mulf %33, %34 : vector<8x2xf32>
    %36 = arith.mulf %32, %32 : vector<8x2xf32>
    %37 = arith.subf %35, %36 : vector<8x2xf32>
    %cst_19 = arith.constant 0.000000e+00 : f32
    %38 = vector.broadcast %cst_19 : f32 to vector<8x2xf32>
    %39 = arith.maximumf %37, %38 : vector<8x2xf32>
    %cst_20 = arith.constant 9.99999974E-6 : f32
    %40 = vector.broadcast %cst_20 : f32 to vector<8x2xf32>
    %41 = arith.addf %39, %40 : vector<8x2xf32>
    %42 = math.rsqrt %41 : vector<8x2xf32>
    %c0_21 = arith.constant 0 : index
    %c0_22 = arith.constant 0 : index
    %43 = vector.load %arg7[%c0_21, %c0_22] : memref<32x16xf32, #tpu.memory_space<vmem>>, vector<32x16xf32>
    %44 = tpu.concatenate %32, %42 in 0 : vector<8x2xf32>, vector<8x2xf32> -> vector<16x2xf32>
    %cst_23 = arith.constant dense<0.000000e+00> : vector<32x2xf32>
    %45 = tpu.matmul %43, %44, %cst_23 {dimension_numbers = #tpu.dot_dimension_numbers<[1], [0], [0], [1], [0, 0, 1, 1], [], []>} : vector<32x16xf32>, vector<16x2xf32>, vector<32x2xf32> -> vector<32x2xf32>
    %46 = vector.extract_strided_slice %45 {offsets = [16, 0], sizes = [16, 2], strides = [1, 1]} : vector<32x2xf32> to vector<16x2xf32>
    %c0_24 = arith.constant 0 : index
    %c0_25 = arith.constant 0 : index
    %47 = vector.load %arg8[%c0_24, %c0_25] : memref<16x1xf32, #tpu.memory_space<vmem>>, vector<16x1xf32>
    %48 = vector.broadcast %47 : vector<16x1xf32> to vector<16x2xf32>
    %49 = arith.mulf %46, %48 : vector<16x2xf32>
    %c0_26 = arith.constant 0 : index
    %c0_27 = arith.constant 0 : index
    %50 = vector.load %arg9[%c0_26, %c0_27] : memref<16x1xf32, #tpu.memory_space<vmem>>, vector<16x1xf32>
    %51 = vector.extract_strided_slice %45 {offsets = [0, 0], sizes = [16, 2], strides = [1, 1]} : vector<32x2xf32> to vector<16x2xf32>
    %52 = arith.mulf %51, %49 : vector<16x2xf32>
    %53 = vector.broadcast %50 : vector<16x1xf32> to vector<16x2xf32>
    %54 = arith.subf %53, %52 : vector<16x2xf32>
    %55 = tpu.concatenate %49, %54 in 0 : vector<16x2xf32>, vector<16x2xf32> -> vector<32x2xf32>
    %c0_28 = arith.constant 0 : index
    %c0_29 = arith.constant 0 : index
    %56 = vector.load %arg5[%c0_28, %c0_29] : memref<2x128xf32, #tpu.memory_space<vmem>>, vector<2x128xf32>
    %cst_30 = arith.constant dense<0.000000e+00> : vector<32x128xf32>
    %57 = tpu.matmul %55, %56, %cst_30 {dimension_numbers = #tpu.dot_dimension_numbers<[1], [0], [0], [1], [0, 0, 1, 1], [], []>} : vector<32x2xf32>, vector<2x128xf32>, vector<32x128xf32> -> vector<32x128xf32>
    %58 = vector.extract_strided_slice %57 {offsets = [0, 0], sizes = [16, 128], strides = [1, 1]} : vector<32x128xf32> to vector<16x128xf32>
    %59 = arith.mulf %23, %58 : vector<16x128xf32>
    %60 = vector.extract_strided_slice %57 {offsets = [16, 0], sizes = [16, 128], strides = [1, 1]} : vector<32x128xf32> to vector<16x128xf32>
    %61 = arith.addf %59, %60 : vector<16x128xf32>
    %c0_31 = arith.constant 0 : index
    %c0_32 = arith.constant 0 : index
    %62 = vector.load %arg10[%c0_31, %c0_32] : memref<16x128xf32, #tpu.memory_space<vmem>>, vector<16x128xf32>
    tpu.vector_store %arg10[%c0_31, %c0_32], %61 {strides = array<i32>} : memref<16x128xf32, #tpu.memory_space<vmem>>, vector<16x128xf32>,
    return
  }
  func.func @transform_0(%arg0: i32) -> (i32, i32) {
    %c0_i32 = arith.constant 0 : i32
    %c0_i32_0 = arith.constant 0 : i32
    return %c0_i32, %arg0 : i32, i32
  }
  func.func @transform_1(%arg0: i32) -> (i32, i32) {
    %c0_i32 = arith.constant 0 : i32
    %c0_i32_0 = arith.constant 0 : i32
    %c0_i32_1 = arith.constant 0 : i32
    return %c0_i32, %c0_i32_0 : i32, i32
  }
  func.func @transform_2(%arg0: i32) -> (i32, i32) {
    %c0_i32 = arith.constant 0 : i32
    %c0_i32_0 = arith.constant 0 : i32
    %c0_i32_1 = arith.constant 0 : i32
    return %c0_i32, %c0_i32_0 : i32, i32
  }
  func.func @transform_3(%arg0: i32) -> (i32, i32) {
    %c0_i32 = arith.constant 0 : i32
    %c0_i32_0 = arith.constant 0 : i32
    %c0_i32_1 = arith.constant 0 : i32
    return %c0_i32, %c0_i32_0 : i32, i32
  }
  func.func @transform_4(%arg0: i32) -> (i32, i32) {
    %c0_i32 = arith.constant 0 : i32
    %c0_i32_0 = arith.constant 0 : i32
    %c0_i32_1 = arith.constant 0 : i32
    return %c0_i32, %c0_i32_0 : i32, i32
  }
  func.func @transform_5(%arg0: i32) -> (i32, i32) {
    %c0_i32 = arith.constant 0 : i32
    %c0_i32_0 = arith.constant 0 : i32
    %c0_i32_1 = arith.constant 0 : i32
    return %c0_i32, %c0_i32_0 : i32, i32
  }
  func.func @transform_6(%arg0: i32) -> (i32, i32) {
    %c0_i32 = arith.constant 0 : i32
    %c0_i32_0 = arith.constant 0 : i32
    %c0_i32_1 = arith.constant 0 : i32
    return %c0_i32, %c0_i32_0 : i32, i32
  }
  func.func @transform_7(%arg0: i32) -> (i32, i32) {
    %c0_i32 = arith.constant 0 : i32
    %c0_i32_0 = arith.constant 0 : i32
    %c0_i32_1 = arith.constant 0 : i32
    return %c0_i32, %c0_i32_0 : i32, i32
  }
  func.func @transform_8(%arg0: i32) -> (i32, i32) {
    %c0_i32 = arith.constant 0 : i32
    %c0_i32_0 = arith.constant 0 : i32
    %c0_i32_1 = arith.constant 0 : i32
    return %c0_i32, %c0_i32_0 : i32, i32
  }
  func.func @transform_9(%arg0: i32) -> (i32, i32) {
    %c0_i32 = arith.constant 0 : i32
    %c0_i32_0 = arith.constant 0 : i32
    return %c0_i32, %arg0 : i32, i32
  }
}

</mosaic_0001>

<bundles_post_ra>
// kernel: convpool_forward.1
= control target key start
LH: loop header
LB: loop body
LE: loop exit
PB: predicated region body
PF: predicated region fallthrough
CT: control target
= control target key end

     0   :  { %v425_v2 = vmov 0   ;;  %vm66_vm0 = vcmask 130048   ;;  %vm218_vm11 = vcmask 261120   ;;  %vm353_vm15 = vcmask 1041408   ;;  %s653_s0 = inlined_call_operand.vmem [shape: f32[144,128], index: 0, kind: input, shape index: {}]   ;;  %s654_s2 = inlined_call_operand.vmem [shape: f32[16,1], index: 2, kind: input, shape index: {}]   ;;  %s655_s1 = inlined_call_operand.vmem [shape: f32[16,144], index: 1, kind: input, shape index: {}]   ;;  %s656_s3 = inlined_call_operand.vmem [shape: f32[128,2], index: 3, kind: input, shape index: {}]   ;;  %s657_s5 = inlined_call_operand.vmem [shape: f32[16,32], index: 5, kind: input, shape index: {}]   ;;  %s658_s7 = inlined_call_operand.vmem [shape: f32[16,1], index: 7, kind: input, shape index: {}]   ;;  %s659_s8 = inlined_call_operand.vmem [shape: f32[16,1], index: 8, kind: input, shape index: {}]   ;;  %s660_s6 = inlined_call_operand.vmem [shape: f32[32,16], index: 6, kind: input, shape index: {}]   ;;  %s661_s4 = inlined_call_operand.vmem [shape: f32[2,128], index: 4, kind: input, shape index: {}]   ;;  %s662_s9 = inlined_call_operand.vmem [shape: f32[16,128], index: 9, kind: output, shape index: {}]  }
   0x1   :  { %v51_v0 = vld [vmem:[%s653_s0 + $0x78] sm:$0xff]  ;;  %v50_v1 = vld [vmem:[%s653_s0 + $0x70] sm:$0xff]  ;;  %412 = vset.pattern.permute.xlu0 %v425_v2  ;;  %v49_v3 = vld [vmem:[%s653_s0 + $0x68] sm:$0xff]  ;;  %413 = vset.pattern.permute.xlu1 %v425_v2 }
   0x2   :  { %73 = vmatpush.msra.mxu0 %v51_v0  ;;  %414 = vset.pattern.permute.xlu2 %v425_v2  ;;  %v48_v4 = vld [vmem:[%s653_s0 + $0x60] sm:$0xff]  ;;  %v47_v5 = vld [vmem:[%s653_s0 + $0x58] sm:$0xff]  ;;  %v53_v6 = vld [vmem:[%s653_s0 + $0x88] sm:$0xff] }
   0x3   :  { %110 = vmatpush.msra.mxu1 %v53_v6  ;;  %v52_v7 = vld [vmem:[%s653_s0 + $0x80] sm:$0xff]  ;;  %v33_v8 = vld [vmem:[%s655_s1 + $0x8] sm:$0xff]  ;;  %v46_v10 = vld [vmem:[%s653_s0 + $0x50] sm:$0xff] }
   0x4   :  { %74 = vmatpush.msra.mxu0 %v50_v1  ;;  %v54_v9 = vld [vmem:[%s654_s2] sm:$0xff]  ;;  %v45_v11 = vld [vmem:[%s653_s0 + $0x48] sm:$0xff]  ;;  %v43_v14 = vld [vmem:[%s653_s0 + $0x38] sm:$0xff] }
   0x5   :  { %58 = vperm.xlu0 %412, %v54_v9   ;;  %111 = vmatpush.msra.mxu1 %v52_v7  ;;  %v44_v12 = vld [vmem:[%s653_s0 + $0x40] sm:$0xff]  ;;  %v55_v13 = vld [vmem:[%s654_s2 + $0x8] sm:$0xff]  ;;  %v35_v15 = vld [vmem:[%s655_s1 + $0x18] sm:$0xff] }
   0x6   :  { %75 = vmatpush.msra.mxu0 %v49_v3  ;;  %396 = vmatmul.msk.f32.vlgmr.msra.gmra.mxu1 %vm66_vm0, %v33_v8  ;;  %v42_v16 = vld [vmem:[%s653_s0 + $0x30] sm:$0xff]  ;;  %v41_v17 = vld [vmem:[%s653_s0 + $0x28] sm:$0xff]  ;;  %v40_v18 = vld [vmem:[%s653_s0 + $0x20] sm:$0xff] }
   0x7   :  { %v39_v19 = vld [vmem:[%s653_s0 + $0x18] sm:$0xff]  ;;  %v38_v20 = vld [vmem:[%s653_s0 + $0x10] sm:$0xff]  ;;  %v37_v21 = vld [vmem:[%s653_s0 + $0x8] sm:$0xff] }
   0x8   :  { %76 = vmatpush.msra.mxu0 %v48_v4  ;;  %v36_v22 = vld [vmem:[%s653_s0] sm:$0xff]  ;;  %v34_v24 = vld [vmem:[%s655_s1 + $0x10] sm:$0xff]  ;;  %v186_v25 = vld [vmem:[%s656_s3 + $0x78] sm:$0xff] }
   0x9   :  { %v32_v23 = vld [vmem:[%s655_s1] sm:$0xff]  ;;  %187 = vmatpush.msra.mxu2 %v186_v25  ;;  %v185_v26 = vld [vmem:[%s656_s3 + $0x70] sm:$0xff]  ;;  %v184_v27 = vld [vmem:[%s656_s3 + $0x68] sm:$0xff] }
   0xa   :  { %77 = vmatpush.msra.mxu0 %v47_v5  ;;  %v183_v28 = vld [vmem:[%s656_s3 + $0x60] sm:$0xff]  ;;  %v182_v29 = vld [vmem:[%s656_s3 + $0x58] sm:$0xff]  ;;  %v181_v30 = vld [vmem:[%s656_s3 + $0x50] sm:$0xff] }
   0xb   :  { %188 = vmatpush.msra.mxu2 %v185_v26  ;;  %v180_v31 = vld [vmem:[%s656_s3 + $0x48] sm:$0xff]  ;;  %v179_v32 = vld [vmem:[%s656_s3 + $0x40] sm:$0xff]  ;;  %v178_v33 = vld [vmem:[%s656_s3 + $0x38] sm:$0xff] }
   0xc   :  { %78 = vmatpush.msra.mxu0 %v46_v10  ;;  %v177_v34 = vld [vmem:[%s656_s3 + $0x30] sm:$0xff]  ;;  %v176_v37 = vld [vmem:[%s656_s3 + $0x28] sm:$0xff]  ;;  %v175_v38 = vld [vmem:[%s656_s3 + $0x20] sm:$0xff] }
   0xd   :  { %63 = vperm.xlu0 %412, %v55_v13   ;;  %189 = vmatpush.msra.mxu2 %v184_v27  ;;  %v174_v40 = vld [vmem:[%s656_s3 + $0x18] sm:$0xff]  ;;  %v173_v42 = vld [vmem:[%s656_s3 + $0x10] sm:$0xff]  ;;  %v172_v44 = vld [vmem:[%s656_s3 + $0x8] sm:$0xff] }
   0xe   :  { %79 = vmatpush.msra.mxu0 %v45_v11  ;;  %397 = vmatmul.msk.f32.gmra.mxu1 %vm66_vm0, %v35_v15  ;;  %v171_v46 = vld [vmem:[%s656_s3] sm:$0xff] }
   0xf   :  { %190 = vmatpush.msra.mxu2 %v183_v28 }
  0x10   :  { %80 = vmatpush.msra.mxu0 %v44_v12 }
  0x11   :  { %191 = vmatpush.msra.mxu2 %v182_v29 }
  0x12   :  { %81 = vmatpush.msra.mxu0 %v43_v14 }
  0x13   :  { %192 = vmatpush.msra.mxu2 %v181_v30 }
  0x14   :  { %82 = vmatpush.msra.mxu0 %v42_v16 }
  0x15   :  { %193 = vmatpush.msra.mxu2 %v180_v31 }
  0x16   :  { %83 = vmatpush.msra.mxu0 %v41_v17 }
  0x17   :  { %194 = vmatpush.msra.mxu2 %v179_v32 }
  0x18   :  { %84 = vmatpush.msra.mxu0 %v40_v18 }
  0x19   :  { %195 = vmatpush.msra.mxu2 %v178_v33  ;;  %v216_v33 = vld [vmem:[%s657_s5] sm:$0xff] }
  0x1a   :  { %85 = vmatpush.msra.mxu0 %v39_v19 }
  0x1b   :  { %196 = vmatpush.msra.mxu2 %v177_v34  ;;  %v217_v34 = vld [vmem:[%s657_s5 + $0x8] sm:$0xff] }
  0x1c   :  { %86 = vmatpush.msra.mxu0 %v38_v20 }
  0x1d   :  { %197 = vmatpush.msra.mxu2 %v176_v37 }
  0x1e   :  { %87 = vmatpush.msra.mxu0 %v37_v21 }
  0x1f   :  { %198 = vmatpush.msra.mxu2 %v175_v38 }
  0x20   :  { %88 = vmatpush.msra.mxu0 %v36_v22 }
  0x21   :  { %89 = vmatmul.f32.vlgmr.msra.gmra.mxu0 %v32_v23  ;;  %199 = vmatpush.msra.mxu2 %v174_v40 }
  0x23   :  { %200 = vmatpush.msra.mxu2 %v173_v42 }
  0x25   :  { %201 = vmatpush.msra.mxu2 %v172_v44 }
  0x27   :  { %202 = vmatpush.msra.mxu2 %v171_v46 }
  0x29   :  { %92 = vmatmul.f32.gmra.mxu0 %v34_v24 }
  0x77   :  { %v59_v35 = vpop.permute.xlu0 %58 }
  0x7f   :  { %v64_v47 = vpop.permute.xlu0 %63 }
  0x83   :  { %v113_v36 = vpop.f32.mrf.mxu1 }
  0x8b   :  { %v116_v50 = vpop.f32.mrf.mxu1 }
  0x9e   :  { %v90_v39 = vpop.f32.mrf.mxu0 }
  0x9f   :  { %v91_v41 = vadd.f32 %v90_v39, %v59_v35 }
  0xa1   :  { %v114_v43 = vadd.f32 %v113_v36, %v91_v41 }
  0xa3   :  { %v119_v45 = vmin.f32 %v114_v43, 20.0  ;;  %vm129_vm5 = vcmp.gt.f32.partialorder %v114_v43, 20.0 }
  0xa5   :  { %v121_v48 = vmul.f32 1.442695, %v119_v45  ;;  %v309_v45 = vld [vmem:[%s658_s7] sm:$0xff] }
  0xa6   :  { %v93_v49 = vpop.f32.mrf.mxu0  ;;  %313 = vperm.xlu1 %413, %v309_v45  }
  0xa7   :  { %415 = vpow2.f32 %v121_v48  ;;  %v94_v51 = vadd.f32 %v93_v49, %v64_v47  ;;  %v323_v49 = vld [vmem:[%s659_s8] sm:$0xff] }
  0xa8   :  { %329 = vperm.xlu2 %414, %v323_v49  }
  0xa9   :  { %v117_v52 = vadd.f32 %v116_v50, %v94_v51  ;;  %v310_v50 = vld [vmem:[%s658_s7 + $0x8] sm:$0xff] }
  0xab   :  { %v120_v53 = vmin.f32 %v117_v52, 20.0  ;;  %vm130_vm10 = vcmp.gt.f32.partialorder %v117_v52, 20.0 }
  0xad   :  { %v416_v54 = vpop.eup %415  ;;  %v123_v55 = vmul.f32 1.442695, %v120_v53  ;;  %v264_v53 = vld [vmem:[%s660_s6] sm:$0xff] }
  0xae   :  { %v125_v56 = vadd.f32 1.0, %v416_v54  ;;  %318 = vperm.xlu1 %413, %v310_v50   ;;  %v324_v54 = vld [vmem:[%s659_s8 + $0x8] sm:$0xff] }
  0xaf   :  { %417 = vpow2.f32 %v123_v55  ;;  %v265_v55 = vld [vmem:[%s660_s6 + $0x8] sm:$0xff] }
  0xb0   :  { %v127_v57 = vmul.f32 %v125_v56, %v125_v56  ;;  %334 = vperm.xlu2 %414, %v324_v54   ;;  %v266_v56 = vld [vmem:[%s660_s6 + $0x10] sm:$0xff] }
  0xb2   :  { %v135_v58 = vadd.f32 1.0, %v127_v57  ;;  %v398_v3 = vadd.f32 -1.0, %v127_v57  ;;  %v267_v57 = vld [vmem:[%s660_s6 + $0x18] sm:$0xff] }
  0xb4   :  { %419 = vrcp.f32 %v135_v58  ;;  %v148_v2 = vand.u32 2147483648, %v135_v58  ;;  %v146_v5 = vand.u32 2147483647, %v135_v58  ;;  %vm142_vm2 = vweird.f32 %v135_v58 }
  0xb5   :  { %v418_v59 = vpop.eup %417  ;;  %v133_v9 = vmul.f32 %v398_v3, %v114_v43 }
  0xb6   :  { %v126_v60 = vadd.f32 1.0, %v418_v59  ;;  %v149_v8 = vor.u32 1.1754944e-38, %v148_v2  ;;  %vm147_vm4 = vcmp.eq.f32.partialorder %v146_v5, 8.507059e+37 }
  0xb8   :  { %v128_v61 = vmul.f32 %v126_v60, %v126_v60 }
  0xba   :  { %v420_v62 = vpop.eup %419  ;;  %v136_v63 = vadd.f32 1.0, %v128_v61  ;;  %v399_v15 = vadd.f32 -1.0, %v128_v61 }
  0xbb   :  { %v138_v0 = vmul.f32 %v420_v62, %v135_v58  ;;  %vm143_vm1 = vweird.f32 %v420_v62  ;;  %v339_v58 = vld [vmem:[%s661_s4] sm:$0x3] }
  0xbc   :  { %421 = vrcp.f32 %v136_v63  ;;  %vm144_vm3 = vmor %vm142_vm2, %vm143_vm1  ;;  %v162_v16 = vand.u32 2147483648, %v136_v63  ;;  %v160_v19 = vand.u32 2147483647, %v136_v63  ;;  %vm156_vm7 = vweird.f32 %v136_v63 }
  0xbd   :  { %v139_v1 = vsub.f32 1.0, %v138_v0  ;;  %v134_v22 = vmul.f32 %v399_v15, %v117_v52  ;;  %vm340_vm1 = vcmask 15360  }
  0xbe   :  { %v163_v21 = vor.u32 1.1754944e-38, %v162_v16  ;;  %vm161_vm9 = vcmp.eq.f32.partialorder %v160_v19, 8.507059e+37 }
  0xbf   :  { %v140_v4 = vmul.f32 %v420_v62, %v139_v1 }
  0xc1   :  { %v141_v6 = vadd.f32 %v420_v62, %v140_v4 }
  0xc2   :  { %v422_v7 = vpop.eup %421 }
  0xc3   :  { %v145_v10 = vsel %vm144_vm3, %v420_v62, %v141_v6  ;;  %v152_v11 = vmul.f32 %v422_v7, %v136_v63  ;;  %vm157_vm6 = vweird.f32 %v422_v7 }
  0xc4   :  { %v150_v12 = vsel %vm147_vm4, %v149_v8, %v145_v10  ;;  %vm158_vm8 = vmor %vm156_vm7, %vm157_vm6 }
  0xc5   :  { %v165_v13 = vmul.f32 %v150_v12, %v133_v9  ;;  %v153_v14 = vsub.f32 1.0, %v152_v11 }
  0xc7   :  { %v598_v17 = vsel %vm129_vm5, %v114_v43, %v165_v13  ;;  %v154_v18 = vmul.f32 %v422_v7, %v153_v14 }
  0xc8   :  { %203 = vmatmul.f32.vlgmr.msra.gmra.mxu2 %v598_v17  ;;  %v169_v27 = vmul.f32 %v598_v17, %v598_v17 }
  0xc9   :  { %v155_v20 = vadd.f32 %v422_v7, %v154_v18 }
  0xcb   :  { %v159_v23 = vsel %vm158_vm8, %v422_v7, %v155_v20 }
  0xcc   :  { %v164_v24 = vsel %vm161_vm9, %v163_v21, %v159_v23 }
  0xcd   :  { %v166_v25 = vmul.f32 %v164_v24, %v134_v22 }
  0xcf   :  { %v601_v26 = vsel %vm130_vm10, %v117_v52, %v166_v25 }
  0xd0   :  { %206 = vmatmul.f32.gmra.mxu2 %v601_v26  ;;  %v170_v28 = vmul.f32 %v601_v26, %v601_v26 }
  0xd8   :  { %209 = vmatmul.f32.gmra.mxu2 %v169_v27 }
  0xe0   :  { %212 = vmatmul.f32.gmra.mxu2 %v170_v28 }
 0x102   :  { %v330_v3 = vpop.permute.xlu2 %329 }
 0x10a   :  { %v335_v7 = vpop.permute.xlu2 %334 }
 0x118   :  { %v314_v61 = vpop.permute.xlu1 %313 }
 0x120   :  { %v319_v0 = vpop.permute.xlu1 %318 }
 0x14b   :  { %v204_v29 = vpop.f32.mrf.mxu2 }
 0x153   :  { %v207_v30 = vpop.f32.mrf.mxu2 }
 0x15b   :  { %v210_v31 = vpop.f32.mrf.mxu2 }
 0x163   :  { %v213_v32 = vpop.f32.mrf.mxu2 }
 0x164   :  { %237 = vmatpush.msra.mxu3 %v213_v32 }
 0x166   :  { %238 = vmatpush.msra.mxu3 %v210_v31 }
 0x168   :  { %239 = vmatpush.msra.mxu3 %v207_v30 }
 0x16a   :  { %240 = vmatpush.msra.mxu3 %v204_v29 }
 0x16b   :  { %400 = vmatmul.msk.f32.vlgmr.msra.gmra.mxu3 %vm218_vm11, %v216_v33 }
 0x16c   :  { %406 = vmatpush.msk.msrb.mxu3 %vm353_vm15, %v339_v58 }
 0x173   :  { %401 = vmatmul.msk.f32.gmra.mxu3 %vm218_vm11, %v217_v34 }
 0x1ee   :  { %v242_v35 = vpop.f32.mrf.mxu3 }
 0x1ef   :  { %v248_v36 = vmul.f32 0.0078125, %v242_v35 }
 0x1f1   :  { %v250_v38 = vmul.f32 %v248_v36, %v248_v36 }
 0x1f6   :  { %v245_v37 = vpop.f32.mrf.mxu3 }
 0x1f7   :  { %v249_v39 = vmul.f32 0.0078125, %v245_v37 }
 0x1f9   :  { %v251_v40 = vsub.f32 %v249_v39, %v250_v38 }
 0x1fb   :  { %v252_v41 = vmax.f32 %v251_v40, 0.0 }
 0x1fd   :  { %v253_v42 = vadd.f32 1e-05, %v252_v41 }
 0x1ff   :  { %423 = vrsqrt.f32 %v253_v42  ;;  %vm260_vm13 = vweird.f32 %v253_v42 }
 0x205   :  { %v424_v43 = vpop.eup %423 }
 0x206   :  { %v255_v44 = vmul.f32 %v424_v43, %v253_v42  ;;  %vm261_vm12 = vweird.f32 %v424_v43 }
 0x207   :  { %vm262_vm14 = vmor %vm260_vm13, %vm261_vm12 }
 0x208   :  { %v256_v46 = vmul.f32 %v424_v43, %v255_v44 }
 0x20a   :  { %v257_v47 = vmul.f32 0.5, %v256_v46 }
 0x20c   :  { %v258_v48 = vsub.f32 1.5, %v257_v47 }
 0x20e   :  { %v259_v51 = vmul.f32 %v424_v43, %v258_v48 }
 0x210   :  { %v263_v52 = vsel %vm262_vm14, %v424_v43, %v259_v51 }
 0x211   :  { %294 = vmatpush.msrb.mxu1 %v263_v52 }
 0x213   :  { %295 = vmatpush.msrb.mxu1 %v248_v36 }
 0x214   :  { %402 = vmatmul.msk.f32.vlgmr.msrb.gmra.mxu1 %vm66_vm0, %v264_v53 }
 0x21c   :  { %403 = vmatmul.msk.f32.gmra.mxu1 %vm66_vm0, %v265_v55 }
 0x224   :  { %404 = vmatmul.msk.f32.gmra.mxu1 %vm66_vm0, %v266_v56 }
 0x22c   :  { %405 = vmatmul.msk.f32.gmra.mxu1 %vm66_vm0, %v267_v57 }
 0x291   :  { %v297_v59 = vpop.f32.mrf.mxu1 }
 0x299   :  { %v300_v60 = vpop.f32.mrf.mxu1 }
 0x2a1   :  { %v303_v62 = vpop.f32.mrf.mxu1 }
 0x2a2   :  { %v321_v63 = vmul.f32 %v314_v61, %v303_v62 }
 0x2a4   :  { %407 = vmatmul.msk.f32.vlgmr.msrb.gmra.mxu3 %vm340_vm1, %v321_v63  ;;  %v325_v4 = vmul.f32 %v321_v63, %v297_v59 }
 0x2a6   :  { %v337_v5 = vsub.f32 %v330_v3, %v325_v4 }
 0x2a9   :  { %v306_v1 = vpop.f32.mrf.mxu1 }
 0x2aa   :  { %v322_v2 = vmul.f32 %v319_v0, %v306_v1 }
 0x2ac   :  { %408 = vmatmul.msk.f32.gmra.mxu3 %vm340_vm1, %v322_v2  ;;  %v326_v6 = vmul.f32 %v322_v2, %v300_v60 }
 0x2ae   :  { %v338_v8 = vsub.f32 %v335_v7, %v326_v6 }
 0x2b4   :  { %409 = vmatmul.msk.f32.gmra.mxu3 %vm340_vm1, %v337_v5 }
 0x2bc   :  { %410 = vmatmul.msk.f32.gmra.mxu3 %vm340_vm1, %v338_v8 }
 0x327   :  { %v374_v9 = vpop.f32.mrf.mxu3 }
 0x328   :  { %v386_v11 = vmul.f32 %v374_v9, %v598_v17 }
 0x32f   :  { %v377_v10 = vpop.f32.mrf.mxu3 }
 0x330   :  { %v387_v14 = vmul.f32 %v377_v10, %v601_v26 }
 0x337   :  { %v380_v12 = vpop.f32.mrf.mxu3 }
 0x338   :  { %v388_v13 = vadd.f32 %v386_v11, %v380_v12 }
 0x33a   :  { %390 = vst [vmem:[%s662_s9] sm:$0xff] %v388_v13 }
 0x33f   :  { %v383_v15 = vpop.f32.mrf.mxu3 }
 0x340   :  { %v389_v16 = vadd.f32 %v387_v14, %v383_v15 }
 0x342   :  { %391 = vst [vmem:[%s662_s9 + $0x8] sm:$0xff] %v389_v16 }

</bundles_post_ra>
